<compile_context>
chip_gen: v7x
topology: tpu7x:2x2x1
jax: 0.10.0
libtpu: 0.0.40
codegen_flags: <defaults>
</compile_context>

<pallas_src>
import jax
import jax.numpy as jnp
from jax.experimental import pallas as pl
from jax.experimental.pallas import tpu as pltpu


def _round_up(n, m):
    return ((n + m - 1) // m) * m


def time_embedding_kernel(x_ref, w_ref, b_ref, f_ref, o_ref):
    # x_ref: (1, tm) f32   -- lane-dense row of inputs
    # w_ref: (H, 1) f32, b_ref: (H, 1) f32
    # f_ref: (H, O) f32    -- VMEM-resident projection
    # o_ref: (tm, O) f32
    x = x_ref[...]                                   # (1, tm)
    w = w_ref[...]                                   # (H, 1)
    b = b_ref[...]                                   # (H, 1)

    # Transposed (H, tm) layout: every VPU/EUP op is 128-lane dense.
    logits = w * x + b                               # (H, tm)

    # Numerically-stable softmax over H (axis 0), all in f32.
    m = jnp.max(logits, axis=0, keepdims=True)       # (1, tm)
    e = jnp.exp(logits - m)                          # (H, tm)
    denom = jnp.sum(e, axis=0, keepdims=True)        # (1, tm)
    p = e * (1.0 / denom)                            # normalized probs (H, tm)

    # Project: contract H (axis 0 of p) against emb_final (H, O) -> (tm, O).
    y = jax.lax.dot_general(
        p, f_ref[...],
        dimension_numbers=(((0,), (0,)), ((), ())),
        preferred_element_type=jnp.float32)          # (tm, O)
    o_ref[...] = y.astype(o_ref.dtype)


def _choose_row_tile(M, tm_req):
    """Row tile: multiple of 128 lanes, clamped for tiny inputs, and split so
    the 'parallel' grid axis gives both v7x TensorCores work when M is big."""
    tm = _round_up(min(tm_req, max(M, 1)), 128)
    if M > 256 and _round_up(M, tm) // tm < 2:
        tm = _round_up((M + 1) // 2, 128)
    return tm


def time_embedding(x, emb_weights, emb_biases, emb_final, *, tm=2048):
    """x: (B, S) -> (B, S, O)."""
    B, S = x.shape
    H = emb_weights.shape[0]
    O = emb_final.shape[1]
    M = B * S

    tm = _choose_row_tile(M, tm)
    M_pad = _round_up(M, tm)
    grid_m = M_pad // tm

    # Lane-dense x: one (1, M_pad) row, tiled (1, tm) along the lane axis.
    x_row = jnp.zeros((1, M_pad), jnp.float32).at[0, :M].set(
        x.reshape(M).astype(jnp.float32))
    w2 = emb_weights.reshape(H, 1).astype(jnp.float32)
    b2 = emb_biases.reshape(H, 1).astype(jnp.float32)
    f2 = emb_final.astype(jnp.float32)               # (H, O), f32, no padding

    cost = pl.CostEstimate(
        flops=2 * M_pad * H * O,
        transcendentals=M_pad * H,
        bytes_accessed=(M_pad * 4                    # x in
                        + M_pad * O * 4              # out
                        + 2 * H * 4                  # weights + biases
                        + H * O * 4),                # projection
    )

    out = pl.pallas_call(
        time_embedding_kernel,
        out_shape=jax.ShapeDtypeStruct((M_pad, O), jnp.float32),
        grid_spec=pltpu.PrefetchScalarGridSpec(
            num_scalar_prefetch=0,
            grid=(grid_m,),
            in_specs=[
                pl.BlockSpec((1, tm), lambda i: (0, i)),   # x tiles (lane-dense)
                pl.BlockSpec((H, 1), lambda i: (0, 0)),    # weights (resident)
                pl.BlockSpec((H, 1), lambda i: (0, 0)),    # biases (resident)
                pl.BlockSpec((H, O), lambda i: (0, 0)),    # final proj (resident)
            ],
            out_specs=pl.BlockSpec((tm, O), lambda i: (i, 0)),
        ),
        compiler_params=pltpu.CompilerParams(
            dimension_semantics=("parallel",)),      # shard rows across TCs on v7x
        cost_estimate=cost,
    )(x_row, w2, b2, f2)

    return out[:M].reshape(B, S, O)


def time_embedding_ref(x, emb_weights, emb_biases, emb_final):
    """Pure-JAX reference mirroring the PyTorch forward (f32 everywhere)."""
    logits = x[..., None] * emb_weights + emb_biases
    probs = jax.nn.softmax(logits, axis=-1)
    return jnp.einsum('bsv,vi->bsi', probs, emb_final)


if __name__ == "__main__":
    # Small shapes implied by the forward: x is (batch, seq)
    B, S = 2, 8
    hidden_embedding_size = 32
    output_dim = 16

    key = jax.random.PRNGKey(0)
    kx, kw, kb, kf = jax.random.split(key, 4)

    x = jax.random.normal(kx, (B, S), dtype=jnp.float32)
    emb_weights = jax.random.normal(kw, (hidden_embedding_size,), dtype=jnp.float32)
    emb_biases = jax.random.normal(kb, (hidden_embedding_size,), dtype=jnp.float32)
    emb_final = jax.random.normal(kf, (hidden_embedding_size, output_dim),
                                  dtype=jnp.float32)

    y = time_embedding(x, emb_weights, emb_biases, emb_final)
    y = jax.block_until_ready(y)

    y_ref = time_embedding_ref(x, emb_weights, emb_biases, emb_final)
    assert y.shape == (B, S, output_dim)
    # f32 math end-to-end (default-precision MXU accumulation is the only
    # deviation from the pure-f32 reference).
    assert jnp.allclose(y, y_ref, atol=1e-2, rtol=1e-2), "mismatch vs reference"

    print("KERNEL_OK")
</pallas_src>

<mosaic_0001>
module attributes {stable_mosaic.version = 11 : i64} {
  func.func @time_embedding_kernel(%arg0: i32, %arg1: memref<1x128xf32, #tpu.memory_space<vmem>>, %arg2: memref<32x1xf32, #tpu.memory_space<vmem>>, %arg3: memref<32x1xf32, #tpu.memory_space<vmem>>, %arg4: memref<32x16xf32, #tpu.memory_space<vmem>>, %arg5: memref<128x16xf32, #tpu.memory_space<vmem>>) attributes {dimension_semantics = [#tpu.dimension_semantics<parallel>], iteration_bounds = array<i64: 1>, scalar_prefetch = 0 : i64, scratch_operands = 0 : i64, tpu.core_type = #tpu.core_type<tc>, window_params = [{transform_indices = @transform_0, window_bounds = array<i64: 1, 128>}, {pipeline_mode = #tpu.pipeline_mode<synchronous>, transform_indices = @transform_1, window_bounds = array<i64: 32, 1>}, {pipeline_mode = #tpu.pipeline_mode<synchronous>, transform_indices = @transform_2, window_bounds = array<i64: 32, 1>}, {pipeline_mode = #tpu.pipeline_mode<synchronous>, transform_indices = @transform_3, window_bounds = array<i64: 32, 16>}, {transform_indices = @transform_4, window_bounds = array<i64: 128, 16>}]} {
    %c0 = arith.constant 0 : index
    %c0_0 = arith.constant 0 : index
    %0 = vector.load %arg1[%c0, %c0_0] : memref<1x128xf32, #tpu.memory_space<vmem>>, vector<1x128xf32>
    %c0_1 = arith.constant 0 : index
    %c0_2 = arith.constant 0 : index
    %1 = vector.load %arg2[%c0_1, %c0_2] : memref<32x1xf32, #tpu.memory_space<vmem>>, vector<32x1xf32>
    %c0_3 = arith.constant 0 : index
    %c0_4 = arith.constant 0 : index
    %2 = vector.load %arg3[%c0_3, %c0_4] : memref<32x1xf32, #tpu.memory_space<vmem>>, vector<32x1xf32>
    %3 = vector.broadcast %1 : vector<32x1xf32> to vector<32x128xf32>
    %4 = vector.broadcast %0 : vector<1x128xf32> to vector<32x128xf32>
    %5 = arith.mulf %3, %4 : vector<32x128xf32>
    %6 = vector.broadcast %2 : vector<32x1xf32> to vector<32x128xf32>
    %7 = arith.addf %5, %6 : vector<32x128xf32>
    %cst = arith.constant dense<0xFF800000> : vector<128xf32>
    %8 = vector.multi_reduction <maximumf>, %7, %cst [0] : vector<32x128xf32> to vector<128xf32>
    %9 = vector.shape_cast %8 : vector<128xf32> to vector<1x128xf32>
    %10 = vector.broadcast %9 : vector<1x128xf32> to vector<32x128xf32>
    %11 = arith.subf %7, %10 : vector<32x128xf32>
    %12 = math.exp %11 : vector<32x128xf32>
    %cst_5 = arith.constant dense<0.000000e+00> : vector<128xf32>
    %13 = vector.multi_reduction <add>, %12, %cst_5 [0] : vector<32x128xf32> to vector<128xf32>
    %14 = vector.shape_cast %13 : vector<128xf32> to vector<1x128xf32>
    %cst_6 = arith.constant 1.000000e+00 : f32
    %15 = vector.broadcast %cst_6 : f32 to vector<1x128xf32>
    %16 = arith.divf %15, %14 : vector<1x128xf32>
    %17 = vector.broadcast %16 : vector<1x128xf32> to vector<32x128xf32>
    %18 = arith.mulf %12, %17 : vector<32x128xf32>
    %c0_7 = arith.constant 0 : index
    %c0_8 = arith.constant 0 : index
    %19 = vector.load %arg4[%c0_7, %c0_8] : memref<32x16xf32, #tpu.memory_space<vmem>>, vector<32x16xf32>
    %cst_9 = arith.constant dense<0.000000e+00> : vector<128x16xf32>
    %20 = tpu.matmul %18, %19, %cst_9 {dimension_numbers = #tpu.dot_dimension_numbers<[0], [0], [1], [1], [0, 1, 1, 1], [], []>} : vector<32x128xf32>, vector<32x16xf32>, vector<128x16xf32> -> vector<128x16xf32>
    %c0_10 = arith.constant 0 : index
    %c0_11 = arith.constant 0 : index
    %21 = vector.load %arg5[%c0_10, %c0_11] : memref<128x16xf32, #tpu.memory_space<vmem>>, vector<128x16xf32>
    tpu.vector_store %arg5[%c0_10, %c0_11], %20 {strides = array<i32>} : memref<128x16xf32, #tpu.memory_space<vmem>>, vector<128x16xf32>,
    return
  }
  func.func @transform_0(%arg0: i32) -> (i32, i32) {
    %c0_i32 = arith.constant 0 : i32
    %c0_i32_0 = arith.constant 0 : i32
    return %c0_i32, %arg0 : i32, i32
  }
  func.func @transform_1(%arg0: i32) -> (i32, i32) {
    %c0_i32 = arith.constant 0 : i32
    %c0_i32_0 = arith.constant 0 : i32
    %c0_i32_1 = arith.constant 0 : i32
    return %c0_i32, %c0_i32_0 : i32, i32
  }
  func.func @transform_2(%arg0: i32) -> (i32, i32) {
    %c0_i32 = arith.constant 0 : i32
    %c0_i32_0 = arith.constant 0 : i32
    %c0_i32_1 = arith.constant 0 : i32
    return %c0_i32, %c0_i32_0 : i32, i32
  }
  func.func @transform_3(%arg0: i32) -> (i32, i32) {
    %c0_i32 = arith.constant 0 : i32
    %c0_i32_0 = arith.constant 0 : i32
    %c0_i32_1 = arith.constant 0 : i32
    return %c0_i32, %c0_i32_0 : i32, i32
  }
  func.func @transform_4(%arg0: i32) -> (i32, i32) {
    %c0_i32 = arith.constant 0 : i32
    %c0_i32_0 = arith.constant 0 : i32
    return %arg0, %c0_i32 : i32, i32
  }
}

</mosaic_0001>

<bundles_post_ra>
// kernel: tpu_custom_call.1
= control target key start
LH: loop header
LB: loop body
LE: loop exit
PB: predicated region body
PF: predicated region fallthrough
CT: control target
= control target key end

     0   :  { %v462_v0 = vmov 0   ;;  %vm152_vm0 = vcmask 261120   ;;  %vm346_vm1 = vcmask 130048   ;;  %s607_s1 = inlined_call_operand.vmem [shape: f32[32,1], index: 1, kind: input, shape index: {}]   ;;  %s608_s2 = inlined_call_operand.vmem [shape: f32[32,1], index: 2, kind: input, shape index: {}]   ;;  %s609_s3 = inlined_call_operand.vmem [shape: f32[32,16], index: 3, kind: input, shape index: {}]   ;;  %s610_s0 = inlined_call_operand.vmem [shape: f32[1,128], index: 0, kind: input, shape index: {}]   ;;  %s611_s4 = inlined_call_operand.vmem [shape: f32[128,16], index: 4, kind: output, shape index: {}]  }
   0x1   :  { %451 = vset.pattern.permute.xlu1 %v462_v0  ;;  %450 = vset.pattern.permute.xlu0 %v462_v0  ;;  %v20_v1 = vld [vmem:[%s607_s1 + $0x10] sm:$0xff]  ;;  %v18_v2 = vld [vmem:[%s607_s1] sm:$0xff]  ;;  %v21_v3 = vld [vmem:[%s607_s1 + $0x18] sm:$0xff] }
   0x2   :  { %38 = vperm.xlu1 %451, %v20_v1   ;;  %28 = vperm.xlu0 %450, %v18_v2   ;;  %v19_v4 = vld [vmem:[%s607_s1 + $0x8] sm:$0xff]  ;;  %v22_v6 = vld [vmem:[%s608_s2] sm:$0xff]  ;;  %v25_v7 = vld [vmem:[%s608_s2 + $0x18] sm:$0xff] }
   0x3   :  { %v23_v5 = vld [vmem:[%s608_s2 + $0x8] sm:$0xff]  ;;  %v24_v8 = vld [vmem:[%s608_s2 + $0x10] sm:$0xff]  ;;  %v116_v9 = vld [vmem:[%s609_s3] sm:$0xff] }
   0x4   :  { %v117_v10 = vld [vmem:[%s609_s3 + $0x8] sm:$0xff]  ;;  %v367_v16 = vld [vmem:[%s610_s0] ss:$0 sm:$0xff]  ;;  %v118_v61 = vld [vmem:[%s609_s3 + $0x10] sm:$0xff] }
   0x5   :  { %v436_v11 = vpack.c.bf16 %v117_v10, %v116_v9  ;;  %v119_v62 = vld [vmem:[%s609_s3 + $0x18] sm:$0xff] }
   0x6   :  { %43 = vperm.xlu1 %451, %v21_v3   ;;  %33 = vperm.xlu0 %450, %v19_v4   ;;  %v440_v63 = vpack.c.bf16 %v119_v62, %v118_v61 }
   0x7   :  { %437 = vmatprep.subr.bf16.mxu0 %v436_v11  ;;  %444 = vmatprep.subr.bf16.mxu1 %v436_v11 }
   0x8   :  { %439 = vmatpush3.bf16.msra.mxu0 %v436_v11  ;;  %446 = vmatpush3.bf16.msra.mxu1 %v436_v11 }
   0x9   :  { %441 = vmatprep.subr.bf16.mxu0 %v440_v63  ;;  %445 = vmatprep.subr.bf16.mxu1 %v440_v63 }
   0xa   :  { %63 = vperm.xlu1 %451, %v23_v5   ;;  %58 = vperm.xlu0 %450, %v22_v6  }
   0xc   :  { %443 = vmatpush3.bf16.msra.mxu0 %v440_v63  ;;  %447 = vmatpush3.bf16.msra.mxu1 %v440_v63 }
   0xe   :  { %73 = vperm.xlu1 %451, %v25_v7   ;;  %68 = vperm.xlu0 %450, %v24_v8  }
  0x81   :  { %v39_v12 = vpop.permute.xlu1 %38  ;;  %v29_v13 = vpop.permute.xlu0 %28 }
  0x82   :  { %v52_v19 = vmul.f32 %v367_v16, %v29_v13  ;;  %v54_v21 = vmul.f32 %v367_v16, %v39_v12 }
  0x85   :  { %v44_v14 = vpop.permute.xlu1 %43  ;;  %v34_v15 = vpop.permute.xlu0 %33 }
  0x86   :  { %v53_v20 = vmul.f32 %v367_v16, %v34_v15  ;;  %v55_v22 = vmul.f32 %v367_v16, %v44_v14 }
  0x89   :  { %v64_v17 = vpop.permute.xlu1 %63  ;;  %v59_v18 = vpop.permute.xlu0 %58 }
  0x8a   :  { %v77_v23 = vadd.f32 %v64_v17, %v53_v20  ;;  %v76_v24 = vadd.f32 %v59_v18, %v52_v19 }
  0x8c   :  { %v80_v29 = vmax.f32 %v76_v24, %v77_v23 }
  0x8d   :  { %v74_v25 = vpop.permute.xlu1 %73  ;;  %v69_v26 = vpop.permute.xlu0 %68 }
  0x8e   :  { %v79_v27 = vadd.f32 %v74_v25, %v55_v22  ;;  %v78_v28 = vadd.f32 %v69_v26, %v54_v21 }
  0x90   :  { %v81_v30 = vmax.f32 %v78_v28, %v79_v27 }
  0x92   :  { %v82_v31 = vmax.f32 %v80_v29, %v81_v30 }
  0x94   :  { %v83_v32 = vrot.slane %v82_v31, 4 }
  0x96   :  { %v84_v33 = vmax.f32 %v82_v31, %v83_v32 }
  0x98   :  { %v85_v34 = vrot.slane %v84_v33, 2 }
  0x9a   :  { %v86_v35 = vmax.f32 %v84_v33, %v85_v34 }
  0x9c   :  { %v87_v36 = vrot.slane %v86_v35, 1 }
  0x9e   :  { %v88_v37 = vmax.f32 %v86_v35, %v87_v36 }
  0xa0   :  { %v89_v38 = vsub.f32 %v76_v24, %v88_v37  ;;  %v90_v39 = vsub.f32 %v77_v23, %v88_v37  ;;  %v91_v40 = vsub.f32 %v78_v28, %v88_v37  ;;  %v92_v41 = vsub.f32 %v79_v27, %v88_v37 }
  0xa2   :  { %v93_v42 = vmul.f32 1.442695, %v89_v38  ;;  %v95_v43 = vmul.f32 1.442695, %v90_v39  ;;  %v97_v44 = vmul.f32 1.442695, %v91_v40 }
  0xa3   :  { %v99_v45 = vmul.f32 1.442695, %v92_v41 }
  0xa4   :  { %452 = vpow2.f32 %v93_v42 }
  0xa5   :  { %454 = vpow2.f32 %v95_v43 }
  0xa6   :  { %456 = vpow2.f32 %v97_v44 }
  0xa7   :  { %458 = vpow2.f32 %v99_v45 }
  0xae   :  { %v453_v46 = vpop.eup %452 }
  0xaf   :  { %v455_v47 = vpop.eup %454 }
  0xb0   :  { %v101_v48 = vadd.f32 %v455_v47, %v453_v46  ;;  %v457_v49 = vpop.eup %456 }
  0xb1   :  { %v459_v51 = vpop.eup %458 }
  0xb2   :  { %v102_v50 = vadd.f32 %v457_v49, %v101_v48 }
  0xb4   :  { %v103_v52 = vadd.f32 %v459_v51, %v102_v50 }
  0xb6   :  { %v104_v53 = vrot.slane %v103_v52, 4 }
  0xb8   :  { %v105_v54 = vadd.f32 %v104_v53, %v103_v52 }
  0xba   :  { %v106_v55 = vrot.slane %v105_v54, 2 }
  0xbc   :  { %v107_v56 = vadd.f32 %v106_v55, %v105_v54 }
  0xbe   :  { %v108_v57 = vrot.slane %v107_v56, 1 }
  0xc0   :  { %v109_v58 = vadd.f32 %v108_v57, %v107_v56 }
  0xc2   :  { %460 = vrcp.f32 %v109_v58 }
  0xcc   :  { %v461_v59 = vpop.eup %460 }
  0xcd   :  { %v112_v60 = vmul.f32 %v461_v59, %v453_v46  ;;  %v113_v0 = vmul.f32 %v461_v59, %v455_v47  ;;  %v114_v1 = vmul.f32 %v461_v59, %v457_v49  ;;  %v115_v2 = vmul.f32 %v461_v59, %v459_v51 }
  0xcf   :  { %120 = vxpose.xlu0.b32.start [1/4] (short) %v112_v60, 128 }
  0xd3   :  { %121 = vxpose.xlu0.b32.cont [2/4] (short) %v113_v0, 128 }
  0xd7   :  { %122 = vxpose.xlu0.b32.cont [3/4] (short) %v114_v1, 128 }
  0xdb   :  { %123 = vxpose.xlu0.b32.end [4/4] (short) %v115_v2, 128 }
 0x14f   :  { %v136_v3 = vpop.trf.xlu0 }
 0x150   :  { %412 = vmatprep.mubr.msk.f32.mxu0 %vm152_vm0, %v136_v3 }
 0x153   :  { %v137_v4 = vpop.trf.xlu0 }
 0x154   :  { %413 = vmatmul.mubr.msk.f32.vlgmr.msra.gmra.mrb[0].mxu0 %vm152_vm0, %v137_v4 }
 0x157   :  { %v138_v5 = vpop.trf.xlu0 }
 0x158   :  { %415 = vmatprep.mubr.msk.f32.mxu0 %vm152_vm0, %v138_v5 }
 0x15b   :  { %v139_v6 = vpop.trf.xlu0 }
 0x15c   :  { %416 = vmatmul.mubr.msk.f32.gmra.mrb[2].mxu0 %vm152_vm0, %v139_v6 }
 0x15f   :  { %v140_v7 = vpop.trf.xlu0 }
 0x160   :  { %418 = vmatprep.mubr.msk.f32.mxu0 %vm152_vm0, %v140_v7 }
 0x163   :  { %v141_v8 = vpop.trf.xlu0 }
 0x164   :  { %419 = vmatmul.mubr.msk.f32.gmra.mrb[4].mxu0 %vm152_vm0, %v141_v8 }
 0x167   :  { %v142_v9 = vpop.trf.xlu0 }
 0x168   :  { %421 = vmatprep.mubr.msk.f32.mxu0 %vm152_vm0, %v142_v9 }
 0x16b   :  { %v143_v10 = vpop.trf.xlu0 }
 0x16c   :  { %422 = vmatmul.mubr.msk.f32.gmra.mrb[6].mxu0 %vm152_vm0, %v143_v10 }
 0x16f   :  { %v144_v11 = vpop.trf.xlu0 }
 0x170   :  { %424 = vmatprep.mubr.msk.f32.mxu1 %vm152_vm0, %v144_v11 }
 0x173   :  { %v145_v12 = vpop.trf.xlu0 }
 0x174   :  { %425 = vmatmul.mubr.msk.f32.vlgmr.msra.gmra.mrb[0].mxu1 %vm152_vm0, %v145_v12 }
 0x177   :  { %v146_v13 = vpop.trf.xlu0 }
 0x178   :  { %427 = vmatprep.mubr.msk.f32.mxu1 %vm152_vm0, %v146_v13 }
 0x17b   :  { %v147_v14 = vpop.trf.xlu0 }
 0x17c   :  { %428 = vmatmul.mubr.msk.f32.gmra.mrb[2].mxu1 %vm152_vm0, %v147_v14 }
 0x17f   :  { %v148_v15 = vpop.trf.xlu0 }
 0x180   :  { %430 = vmatprep.mubr.msk.f32.mxu1 %vm152_vm0, %v148_v15 }
 0x183   :  { %v149_v16 = vpop.trf.xlu0 }
 0x184   :  { %431 = vmatmul.mubr.msk.f32.gmra.mrb[4].mxu1 %vm152_vm0, %v149_v16 }
 0x187   :  { %v150_v17 = vpop.trf.xlu0 }
 0x188   :  { %433 = vmatprep.mubr.msk.f32.mxu1 %vm152_vm0, %v150_v17 }
 0x18b   :  { %v151_v18 = vpop.trf.xlu0 }
 0x18c   :  { %434 = vmatmul.mubr.msk.f32.gmra.mrb[6].mxu1 %vm152_vm0, %v151_v18 }
 0x227   :  { %v414_v19 = vpop.f32.mrb[0].mxu0 }
 0x228   :  { %348 = vst.msk [vmem:[%s611_s4 + $0x8] sm:$0xff] %vm346_vm1, %v414_v19  ;;  %v267_v20 = vpop.f32.mrb[1].mxu0 }
 0x229   :  { %347 = vst.msk [vmem:[%s611_s4] sm:$0xff] %vm346_vm1, %v267_v20 }
 0x22f   :  { %v417_v21 = vpop.f32.mrb[2].mxu0 }
 0x230   :  { %350 = vst.msk [vmem:[%s611_s4 + $0x18] sm:$0xff] %vm346_vm1, %v417_v21  ;;  %v277_v22 = vpop.f32.mrb[3].mxu0 }
 0x231   :  { %349 = vst.msk [vmem:[%s611_s4 + $0x10] sm:$0xff] %vm346_vm1, %v277_v22 }
 0x237   :  { %v420_v23 = vpop.f32.mrb[4].mxu0 }
 0x238   :  { %352 = vst.msk [vmem:[%s611_s4 + $0x28] sm:$0xff] %vm346_vm1, %v420_v23  ;;  %v287_v24 = vpop.f32.mrb[5].mxu0 }
 0x239   :  { %351 = vst.msk [vmem:[%s611_s4 + $0x20] sm:$0xff] %vm346_vm1, %v287_v24 }
 0x23f   :  { %v423_v25 = vpop.f32.mrb[6].mxu0 }
 0x240   :  { %354 = vst.msk [vmem:[%s611_s4 + $0x38] sm:$0xff] %vm346_vm1, %v423_v25  ;;  %v297_v26 = vpop.f32.mrb[7].mxu0 }
 0x241   :  { %353 = vst.msk [vmem:[%s611_s4 + $0x30] sm:$0xff] %vm346_vm1, %v297_v26 }
 0x247   :  { %v426_v27 = vpop.f32.mrb[0].mxu1 }
 0x248   :  { %356 = vst.msk [vmem:[%s611_s4 + $0x48] sm:$0xff] %vm346_vm1, %v426_v27  ;;  %v307_v28 = vpop.f32.mrb[1].mxu1 }
 0x249   :  { %355 = vst.msk [vmem:[%s611_s4 + $0x40] sm:$0xff] %vm346_vm1, %v307_v28 }
 0x24f   :  { %v429_v29 = vpop.f32.mrb[2].mxu1 }
 0x250   :  { %358 = vst.msk [vmem:[%s611_s4 + $0x58] sm:$0xff] %vm346_vm1, %v429_v29  ;;  %v317_v30 = vpop.f32.mrb[3].mxu1 }
 0x251   :  { %357 = vst.msk [vmem:[%s611_s4 + $0x50] sm:$0xff] %vm346_vm1, %v317_v30 }
 0x257   :  { %v432_v31 = vpop.f32.mrb[4].mxu1 }
 0x258   :  { %360 = vst.msk [vmem:[%s611_s4 + $0x68] sm:$0xff] %vm346_vm1, %v432_v31  ;;  %v327_v32 = vpop.f32.mrb[5].mxu1 }
 0x259   :  { %359 = vst.msk [vmem:[%s611_s4 + $0x60] sm:$0xff] %vm346_vm1, %v327_v32 }
 0x25f   :  { %v435_v33 = vpop.f32.mrb[6].mxu1 }
 0x260   :  { %362 = vst.msk [vmem:[%s611_s4 + $0x78] sm:$0xff] %vm346_vm1, %v435_v33  ;;  %v337_v34 = vpop.f32.mrb[7].mxu1 }
 0x261   :  { %361 = vst.msk [vmem:[%s611_s4 + $0x70] sm:$0xff] %vm346_vm1, %v337_v34 }

</bundles_post_ra>
